<compile_context>
chip_gen: v6e
topology: v6e:2x2x1
jax: 0.10.0
libtpu: 0.0.40
codegen_flags: <defaults>
</compile_context>

<pallas_src>
import jax
import jax.numpy as jnp
from jax.experimental import pallas as pl
from jax.experimental.pallas import tpu as pltpu


def _meanshift_kernel(b_ref, x_ref, o_ref):
    # b_ref: (BR, 1)  per-row bias (row = one (batch, channel) plane)
    # x_ref: (BR, BL) tile of the (N*C, H*W) view of the input
    # o_ref: (BR, BL)
    o_ref[...] = (x_ref[...] + b_ref[...]).astype(o_ref.dtype)


def mean_shift(x, mean_rgb, sub):
    """Equivalent of MeanShift(mean_rgb, sub).forward(x) with x in NCHW."""
    N, C, H, W = x.shape
    assert C == 3, "MeanShift operates on 3-channel (RGB) input"

    sign = -1.0 if sub else 1.0
    bias_c = sign * jnp.asarray(mean_rgb, dtype=x.dtype)          # (3,)

    rows = N * C
    cols = H * W

    # Free (no-copy) views: each row of x2 is one contiguous channel plane.
    x2 = x.reshape(rows, cols)
    bias_rows = jnp.tile(bias_c, N).reshape(rows, 1)              # (N*C, 1)

    # ---- Block sizing (lane/sublane dense, ~1 MB per block) ----
    LANE_BLOCK = 2048     # multiple of 128
    SUB_BLOCK = 128       # multiple of 8
    bl = cols if cols <= LANE_BLOCK else LANE_BLOCK   # full dim or mult of 128
    br = rows if rows <= SUB_BLOCK else SUB_BLOCK     # full dim or mult of 8

    grid = (pl.cdiv(rows, br), pl.cdiv(cols, bl))

    itemsize = jnp.dtype(x.dtype).itemsize
    cost = pl.CostEstimate(
        flops=rows * cols,                      # one add per element
        transcendentals=0,
        bytes_accessed=2 * rows * cols * itemsize,
    )

    out2 = pl.pallas_call(
        _meanshift_kernel,
        out_shape=jax.ShapeDtypeStruct((rows, cols), x.dtype),
        grid=grid,
        in_specs=[
            pl.BlockSpec((br, 1), lambda i, j: (i, 0)),    # per-row bias
            pl.BlockSpec((br, bl), lambda i, j: (i, j)),   # input tile
        ],
        out_specs=pl.BlockSpec((br, bl), lambda i, j: (i, j)),
        compiler_params=pltpu.CompilerParams(
            dimension_semantics=("parallel", "parallel"),
        ),
        cost_estimate=cost,
    )(bias_rows, x2)

    return out2.reshape(N, C, H, W)   # free reshape back to NCHW


if __name__ == "__main__":
    key = jax.random.PRNGKey(0)
    N, C, H, W = 2, 3, 16, 16
    x = jax.random.normal(key, (N, C, H, W), dtype=jnp.float32)

    mean_rgb = (0.4488, 0.4371, 0.4040)
    sub = True

    out = mean_shift(x, mean_rgb, sub)
    out = jax.block_until_ready(out)

    # Reference (plain JAX): identity 1x1 conv + bias == per-channel shift.
    sign = -1.0 if sub else 1.0
    ref = x + sign * jnp.asarray(mean_rgb, dtype=jnp.float32).reshape(1, 3, 1, 1)
    assert out.shape == x.shape
    assert jnp.allclose(out, ref, atol=1e-6), "mismatch vs reference"

    print("KERNEL_OK")
</pallas_src>

<mosaic_0001>
module attributes {stable_mosaic.version = 11 : i64} {
  func.func @_meanshift_kernel(%arg0: i32, %arg1: i32, %arg2: memref<6x1xf32, #tpu.memory_space<vmem>>, %arg3: memref<6x256xf32, #tpu.memory_space<vmem>>, %arg4: memref<6x256xf32, #tpu.memory_space<vmem>>) attributes {dimension_semantics = [#tpu.dimension_semantics<parallel>, #tpu.dimension_semantics<parallel>], iteration_bounds = array<i64: 1, 1>, scalar_prefetch = 0 : i64, scratch_operands = 0 : i64, tpu.core_type = #tpu.core_type<tc>, window_params = [{transform_indices = @transform_0, window_bounds = array<i64: 6, 1>}, {transform_indices = @transform_1, window_bounds = array<i64: 6, 256>}, {transform_indices = @transform_2, window_bounds = array<i64: 6, 256>}]} {
    %c0 = arith.constant 0 : index
    %c0_0 = arith.constant 0 : index
    %0 = vector.load %arg3[%c0, %c0_0] : memref<6x256xf32, #tpu.memory_space<vmem>>, vector<6x256xf32>
    %c0_1 = arith.constant 0 : index
    %c0_2 = arith.constant 0 : index
    %1 = vector.load %arg2[%c0_1, %c0_2] : memref<6x1xf32, #tpu.memory_space<vmem>>, vector<6x1xf32>
    %2 = vector.broadcast %1 : vector<6x1xf32> to vector<6x256xf32>
    %3 = arith.addf %0, %2 : vector<6x256xf32>
    %c0_3 = arith.constant 0 : index
    %c0_4 = arith.constant 0 : index
    %4 = vector.load %arg4[%c0_3, %c0_4] : memref<6x256xf32, #tpu.memory_space<vmem>>, vector<6x256xf32>
    tpu.vector_store %arg4[%c0_3, %c0_4], %3 {strides = array<i32>} : memref<6x256xf32, #tpu.memory_space<vmem>>, vector<6x256xf32>,
    return
  }
  func.func @transform_0(%arg0: i32, %arg1: i32) -> (i32, i32) {
    %c0_i32 = arith.constant 0 : i32
    %c0_i32_0 = arith.constant 0 : i32
    return %arg0, %c0_i32 : i32, i32
  }
  func.func @transform_1(%arg0: i32, %arg1: i32) -> (i32, i32) {
    %c0_i32 = arith.constant 0 : i32
    return %arg0, %arg1 : i32, i32
  }
  func.func @transform_2(%arg0: i32, %arg1: i32) -> (i32, i32) {
    %c0_i32 = arith.constant 0 : i32
    return %arg0, %arg1 : i32, i32
  }
}

</mosaic_0001>

<bundles_post_ra>
// kernel: tpu_custom_call.1
= control target key start
LH: loop header
LB: loop body
LE: loop exit
PB: predicated region body
PF: predicated region fallthrough
CT: control target
= control target key end

     0   :  { %7 = vsyncpa [#allocation3], 0  ;;  %s126_s0 = inlined_call_operand.vmem [shape: f32[6,1], index: 0, kind: input, shape index: {}]   ;;  %s127_s1 = inlined_call_operand.hbm [shape: f32[6,256], index: 1, kind: input, shape index: {}]   ;;  %s128_s2 = inlined_call_operand.hbm [shape: f32[6,256], index: 2, kind: output, shape index: {}]  }
   0x1   :  { %8 = vsyncpa [#allocation4], 0  ;;  %s99_s9 = smov [#allocation2]  }
   0x2   :  { %s17_s10 = sshll.u32 %s99_s9, 4  ;;  %s18_s10 = int_to_ptr.vmem [resolvable:$true] %s17_s10 }
   0x3   :  { %s63_s11 = scalar_lea.vmem %s18_s10, 256  ;;  %p68_p1 = scmp.lt.s32.totalorder %s18_s10, %s18_s10 }
   0x4   :  { %p64_p0 = scmp.ne.s32.totalorder %s18_s10, %s63_s11  ;;  %p69_p2 = scmp.lt.s32.totalorder %s63_s11, %s63_s11 }
   0x6   :  { %p70_p3 = por %p69_p2, %p68_p1 }
   0x8   :  { %p71_p4 = pnand %p70_p3, %p64_p0 }
   0xa   :  { %74 = shalt.err (!%p71_p4)
}
   0xb   :  { %20 = dma.hbm_to_vmem [thread:$0]  %s127_s1, 256, %s18_s10, [#allocation3]  }
   0xc   :  { %95 = dma.done.wait [#allocation3], 256  }
   0xd   :  { %96 = vsyncadd [#allocation3], 4294967040  ;;  %v100_v0 = vmov 0   ;;  %v26_v1 = vld [vmem:[%s126_s0] sm:$0x3f]  ;;  %s101_s16 = smov [#allocation5]  }
   0xe   :  { %54 = vset.pattern.permute.xlu0 %v100_v0  ;;  %v24_v2 = vld [vmem:[#allocation2] sm:$0x3f]  ;;  %v25_v3 = vld [vmem:[#allocation2 + $0x8] sm:$0x3f]  ;;  %s42_s17 = sshll.u32 %s101_s16, 4  ;;  %s43_s17 = int_to_ptr.vmem [resolvable:$true] %s42_s17 }
   0xf   :  { %29 = vperm.xlu0 %54, %v26_v1   ;;  %s75_s1 = scalar_lea.vmem %s43_s17, 256  ;;  %p80_p6 = scmp.lt.s32.totalorder %s43_s17, %s43_s17 }
  0x10   :  { %p76_p5 = scmp.ne.s32.totalorder %s43_s17, %s75_s1  ;;  %p81_p7 = scmp.lt.s32.totalorder %s75_s1, %s75_s1 }
  0x12   :  { %p82_p8 = por %p81_p7, %p80_p6 }
  0x14   :  { %p83_p9 = pnand %p82_p8, %p76_p5 }
  0x8a   :  { %v30_v4 = vpop.permute.xlu0 %29 }
  0x8b   :  { %v32_v5 = vadd.f32 %v30_v4, %v24_v2  ;;  %v33_v6 = vadd.f32 %v30_v4, %v25_v3 }
  0x8d   :  { %34 = vst [vmem:[#allocation5] sm:$0x3f] %v32_v5  ;;  %35 = vst [vmem:[#allocation5 + $0x8] sm:$0x3f] %v33_v6 }
  0x8e   :  { %86 = shalt.err (!%p83_p9)
}
  0x8f   :  { %45 = dma.vmem_to_hbm [thread:$0]  %s43_s17, 256, %s128_s2, [#allocation4]  }
  0x90   :  { %97 = dma.done.wait [#allocation4], 256  }
  0x91   :  { %98 = vsyncadd [#allocation4], 4294967040 }
  0x92   :  { %49 = vsyncpa [#allocation3], 1 }
  0x93   :  { %50 = vsyncpa [#allocation4], 1 }

</bundles_post_ra>
